<compile_context>
chip_gen: v5e
topology: v5e:2x2
jax: 0.10.0
libtpu: 0.0.40
codegen_flags: <defaults>
</compile_context>

<pallas_src>
import functools

import jax
import jax.numpy as jnp
from jax import lax
from jax.experimental import pallas as pl
from jax.experimental.pallas import tpu as pltpu


def _round_up(x, mult):
    return ((x + mult - 1) // mult) * mult


def _vn_pool_kernel(x_ref, w_ref, o_ref, acc_ref, *, n_tokens, token_tile):
    # x_ref  : (tb, tn, d*c)   one row block x one token tile (native dtype)
    # w_ref  : (d*c, mec_pad)  block-diagonal weight, VMEM-resident (constant index)
    # o_ref  : (tb, mec_pad)   lane-dense output rows
    # acc_ref: (tb, d*c)       f32 running token-sum accumulator
    k = pl.program_id(1)
    kt = pl.num_programs(1)

    @pl.when(k == 0)
    def _():
        acc_ref[...] = jnp.zeros_like(acc_ref)

    def _accumulate(x):
        # Pool over the token tile; accumulate in f32 without an f32 tile copy.
        acc_ref[...] += jnp.sum(x, axis=1, dtype=jnp.float32)

    if n_tokens % token_tile == 0:
        _accumulate(x_ref[...])
    else:
        rem = n_tokens % token_tile  # static: valid tokens in the ragged last tile

        @pl.when(k < kt - 1)
        def _():
            _accumulate(x_ref[...])

        @pl.when(k == kt - 1)
        def _():
            tok = lax.broadcasted_iota(jnp.int32, x_ref.shape, 1)
            _accumulate(jnp.where(tok < rem, x_ref[...], jnp.zeros((), x_ref.dtype)))

    @pl.when(k == kt - 1)
    def _():
        # (tb, d*c) @ (d*c, mec_pad) on the MXU; weight stays in native dtype.
        o_ref[...] = jnp.dot(
            acc_ref[...], w_ref[...], preferred_element_type=jnp.float32
        ).astype(o_ref.dtype)


@functools.partial(jax.jit, static_argnames=("squeeze_out_pooled_dim", "token_tile"))
def vn_weighted_pool(x, weight, squeeze_out_pooled_dim=True, token_tile=None):
    """x: (b, n, d, c), weight: (m, d, e) -> (b, m, e, c) or (b, e, c)."""
    b, n, d, c = x.shape
    m, d_w, e = weight.shape
    assert d == d_w
    dc = d * c
    mec = m * e * c

    out_dtype = x.dtype
    itemsize = jnp.dtype(x.dtype).itemsize
    sub_mult = 8 * max(1, 4 // itemsize)  # sublane tiling: 8 / 16 / 32 for f32 / bf16 / int8

    # ---- free relayout of x: (b, n, d, c) -> (b, n, d*c); c is innermost ----
    x2 = x.reshape(b, n, dc)

    # ---- tiny block-diagonal weight so acc(tb, d*c) @ W2 -> (tb, m*e*c) directly ----
    eye_c = jnp.eye(c, dtype=weight.dtype)
    w2 = jnp.einsum("mde,ij->dimej", weight, eye_c).reshape(dc, mec)
    mec_pad = _round_up(mec, 128)  # lane-dense, unmasked output stores
    if mec_pad != mec:
        w2 = jnp.pad(w2, ((0, 0), (0, mec_pad - mec)))

    # ---- row (batch) tile: give grid[0] >= 2 when possible (v7x megacore) ----
    if b >= 16:
        tb = min(256, _round_up(-(-b // 2), 8))
    else:
        tb = b
    grid_b = pl.cdiv(b, tb)

    # ---- token tile: largest multiple of 8 whose double-buffered x block fits
    # the per-generation VMEM budget, INCLUDING Mosaic lane/sublane padding ----
    try:
        vmem_cap = int(pltpu.get_tpu_info().vmem_capacity_bytes)
    except Exception:
        vmem_cap = 64 * 1024 * 1024  # conservative fallback (v7x per-core)
    x_budget = min(vmem_cap * 2 // 5, 48 * 1024 * 1024)

    dc_pad = _round_up(dc, 128)
    per_padded_token = 2 * tb * dc_pad * itemsize  # 2x: double-buffered x block
    if token_tile is not None:
        tn = min(int(token_tile), n)
    else:
        max_tn = max(sub_mult, x_budget // max(1, per_padded_token))
        tn = n if max_tn >= n else max(8, (max_tn // 8) * 8)
    grid_n = pl.cdiv(n, tn)

    # ---- explicit VMEM limit sized to the real (padded, double-buffered) footprint ----
    x_block_bytes = tb * _round_up(tn, sub_mult) * dc_pad * itemsize
    w_bytes = _round_up(dc, 8) * mec_pad * jnp.dtype(weight.dtype).itemsize
    out_bytes = _round_up(tb, sub_mult) * mec_pad * itemsize
    acc_bytes = _round_up(tb, 8) * dc_pad * 4
    footprint = 2 * x_block_bytes + 2 * w_bytes + 2 * out_bytes + acc_bytes
    vmem_limit = int(min(vmem_cap, max(footprint + (4 << 20), 16 << 20)))

    kernel = functools.partial(_vn_pool_kernel, n_tokens=n, token_tile=tn)

    out2 = pl.pallas_call(
        kernel,
        out_shape=jax.ShapeDtypeStruct((b, mec_pad), out_dtype),
        grid_spec=pltpu.PrefetchScalarGridSpec(
            num_scalar_prefetch=0,
            grid=(grid_b, grid_n),
            in_specs=[
                pl.BlockSpec((tb, tn, dc), lambda i, k: (i, k, 0)),
                # Constant index map: weight DMA'd once, stays VMEM-resident.
                pl.BlockSpec((dc, mec_pad), lambda i, k: (0, 0)),
            ],
            out_specs=pl.BlockSpec((tb, mec_pad), lambda i, k: (i, 0)),
            scratch_shapes=[pltpu.VMEM((tb, dc), jnp.float32)],
        ),
        compiler_params=pltpu.CompilerParams(
            # row axis independent (megacore-shardable); token axis = reduction, last.
            dimension_semantics=("parallel", "arbitrary"),
            vmem_limit_bytes=vmem_limit,
        ),
    )(x2, w2)

    # ---- undo the tiny output padding / flattening (cheap: output-sized only) ----
    out = out2[:, :mec].reshape(b, m, e, c)
    if m == 1 and squeeze_out_pooled_dim:
        out = out[:, 0]  # (b, e, c)
    return out


if __name__ == "__main__":
    # Shapes consistent with the module: vector-neuron features (b, n, d, c), c = 3.
    b, n, dim, c = 2, 8, 32, 3
    dim_out = dim                 # default(dim_out, dim)
    num_pooled_tokens = 1

    key = jax.random.PRNGKey(0)
    kx, kw = jax.random.split(key)
    x = jax.random.normal(kx, (b, n, dim, c), dtype=jnp.float32)
    # Deterministic stand-in for nn.Parameter(torch.randn(m, dim, dim_out))
    weight = jax.random.normal(kw, (num_pooled_tokens, dim, dim_out), dtype=jnp.float32)

    out = vn_weighted_pool(x, weight, squeeze_out_pooled_dim=True)
    out = jax.block_until_ready(out)
    ref = jnp.einsum("bndc,mde->bmec", x, weight)[:, 0]
    assert out.shape == (b, dim_out, c), out.shape
    assert jnp.allclose(out, ref, atol=1e-4, rtol=1e-4), "mismatch vs reference (squeezed)"

    # Second config: m > 1 (no pooled-dim squeeze) + ragged token count to
    # exercise the in-kernel mask path (n % tn != 0).
    b2, n2, d2, c2, m2, e2 = 3, 13, 32, 3, 2, 16
    kx2, kw2 = jax.random.split(jax.random.PRNGKey(1))
    x_b = jax.random.normal(kx2, (b2, n2, d2, c2), dtype=jnp.float32)
    w_b = jax.random.normal(kw2, (m2, d2, e2), dtype=jnp.float32)
    out_b = vn_weighted_pool(x_b, w_b, squeeze_out_pooled_dim=True, token_tile=8)
    out_b = jax.block_until_ready(out_b)
    ref_b = jnp.einsum("bndc,mde->bmec", x_b, w_b)
    assert out_b.shape == ref_b.shape, out_b.shape
    assert jnp.allclose(out_b, ref_b, atol=1e-4, rtol=1e-4), "mismatch vs reference (ragged)"

    print("KERNEL_OK")
</pallas_src>

<mosaic_0001>
module attributes {stable_mosaic.version = 11 : i64} {
  func.func @_vn_pool_kernel(%arg0: i32, %arg1: i32, %arg2: memref<2x8x96xf32, #tpu.memory_space<vmem>>, %arg3: memref<96x128xf32, #tpu.memory_space<vmem>>, %arg4: memref<2x128xf32, #tpu.memory_space<vmem>>, %arg5: memref<2x96xf32, #tpu.memory_space<vmem>>) attributes {dimension_semantics = [#tpu.dimension_semantics<parallel>, #tpu.dimension_semantics<arbitrary>], iteration_bounds = array<i64: 1, 1>, scalar_prefetch = 0 : i64, scratch_operands = 1 : i64, tpu.core_type = #tpu.core_type<tc>, window_params = [{transform_indices = @transform_0, window_bounds = array<i64: 2, 8, 96>}, {pipeline_mode = #tpu.pipeline_mode<synchronous>, transform_indices = @transform_1, window_bounds = array<i64: 96, 128>}, {transform_indices = @transform_2, window_bounds = array<i64: 2, 128>}]} {
    %c0_i32 = arith.constant 0 : i32
    %0 = arith.cmpi eq, %arg1, %c0_i32 : i32
    %1 = arith.extui %0 : i1 to i32
    %c0_i32_0 = arith.constant 0 : i32
    %2 = arith.cmpi ne, %1, %c0_i32_0 : i32
    scf.if %2 {
      %cst_9 = arith.constant 0.000000e+00 : f32
      %11 = vector.broadcast %cst_9 : f32 to vector<2x96xf32>
      %c0_10 = arith.constant 0 : index
      %c0_11 = arith.constant 0 : index
      %12 = vector.load %arg5[%c0_10, %c0_11] : memref<2x96xf32, #tpu.memory_space<vmem>>, vector<2x96xf32>
      tpu.vector_store %arg5[%c0_10, %c0_11], %11 {strides = array<i32>} : memref<2x96xf32, #tpu.memory_space<vmem>>, vector<2x96xf32>,
    } else {
    }
    %c0 = arith.constant 0 : index
    %c0_1 = arith.constant 0 : index
    %c0_2 = arith.constant 0 : index
    %3 = vector.load %arg2[%c0, %c0_1, %c0_2] : memref<2x8x96xf32, #tpu.memory_space<vmem>>, vector<2x8x96xf32>
    %c0_3 = arith.constant 0 : index
    %c0_4 = arith.constant 0 : index
    %4 = vector.load %arg5[%c0_3, %c0_4] : memref<2x96xf32, #tpu.memory_space<vmem>>, vector<2x96xf32>
    %cst = arith.constant dense<0.000000e+00> : vector<2x96xf32>
    %5 = vector.multi_reduction <add>, %3, %cst [1] : vector<2x8x96xf32> to vector<2x96xf32>
    %6 = arith.addf %4, %5 : vector<2x96xf32>
    %c0_5 = arith.constant 0 : index
    %c0_6 = arith.constant 0 : index
    %7 = vector.load %arg5[%c0_5, %c0_6] : memref<2x96xf32, #tpu.memory_space<vmem>>, vector<2x96xf32>
    tpu.vector_store %arg5[%c0_5, %c0_6], %6 {strides = array<i32>} : memref<2x96xf32, #tpu.memory_space<vmem>>, vector<2x96xf32>,
    %c0_i32_7 = arith.constant 0 : i32
    %8 = arith.cmpi eq, %arg1, %c0_i32_7 : i32
    %9 = arith.extui %8 : i1 to i32
    %c0_i32_8 = arith.constant 0 : i32
    %10 = arith.cmpi ne, %9, %c0_i32_8 : i32
    scf.if %10 {
      %c0_9 = arith.constant 0 : index
      %c0_10 = arith.constant 0 : index
      %11 = vector.load %arg5[%c0_9, %c0_10] : memref<2x96xf32, #tpu.memory_space<vmem>>, vector<2x96xf32>
      %c0_11 = arith.constant 0 : index
      %c0_12 = arith.constant 0 : index
      %12 = vector.load %arg3[%c0_11, %c0_12] : memref<96x128xf32, #tpu.memory_space<vmem>>, vector<96x128xf32>
      %cst_13 = arith.constant dense<0.000000e+00> : vector<2x128xf32>
      %13 = tpu.matmul %11, %12, %cst_13 {dimension_numbers = #tpu.dot_dimension_numbers<[1], [0], [0], [1], [0, 0, 1, 1], [], []>} : vector<2x96xf32>, vector<96x128xf32>, vector<2x128xf32> -> vector<2x128xf32>
      %c0_14 = arith.constant 0 : index
      %c0_15 = arith.constant 0 : index
      %14 = vector.load %arg4[%c0_14, %c0_15] : memref<2x128xf32, #tpu.memory_space<vmem>>, vector<2x128xf32>
      tpu.vector_store %arg4[%c0_14, %c0_15], %13 {strides = array<i32>} : memref<2x128xf32, #tpu.memory_space<vmem>>, vector<2x128xf32>,
    } else {
    }
    return
  }
  func.func @transform_0(%arg0: i32, %arg1: i32) -> (i32, i32, i32) {
    %c0_i32 = arith.constant 0 : i32
    %c0_i32_0 = arith.constant 0 : i32
    return %arg0, %arg1, %c0_i32 : i32, i32, i32
  }
  func.func @transform_1(%arg0: i32, %arg1: i32) -> (i32, i32) {
    %c0_i32 = arith.constant 0 : i32
    %c0_i32_0 = arith.constant 0 : i32
    %c0_i32_1 = arith.constant 0 : i32
    return %c0_i32, %c0_i32_0 : i32, i32
  }
  func.func @transform_2(%arg0: i32, %arg1: i32) -> (i32, i32) {
    %c0_i32 = arith.constant 0 : i32
    %c0_i32_0 = arith.constant 0 : i32
    return %arg0, %c0_i32 : i32, i32
  }
}

</mosaic_0001>

<bundles_post_ra>
// kernel: vn_weighted_pool.1
= control target key start
LH: loop header
LB: loop body
LE: loop exit
PB: predicated region body
PF: predicated region fallthrough
CT: control target
= control target key end

     0   :  { %vm15_vm0 = vcmask 779264   ;;  %v89_v2 = vmov 0.0   ;;  %vm20_vm1 = vcmask 785408   ;;  %vm37_vm2 = vcmask 1041409   ;;  %s155_s1 = inlined_call_operand.vmem [shape: f32[96,128], index: 1, kind: input, shape index: {}]   ;;  %s156_s0 = inlined_call_operand.vmem [shape: f32[2,8,96], index: 0, kind: input, shape index: {}]   ;;  %s157_s2 = inlined_call_operand.vmem [shape: f32[2,128], index: 2, kind: output, shape index: {}]  }
   0x1   :  { %v58_v0 = vld [vmem:[%s155_s1 + $0x58] sm:$0xff]  ;;  %v57_v1 = vld [vmem:[%s155_s1 + $0x50] sm:$0xff]  ;;  %16 = vst.msk [vmem:[#allocation2] sm:$0x3] %vm15_vm0, %v89_v2  ;;  %v56_v3 = vld [vmem:[%s155_s1 + $0x48] sm:$0xff] }
   0x2   :  { %66 = vmatpush.msra.mxu0 %v58_v0  ;;  %v55_v4 = vld [vmem:[%s155_s1 + $0x40] sm:$0xff]  ;;  %v18_v6 = vld [vmem:[%s156_s0 + $0x8] sm:$0xff]  ;;  %v54_v9 = vld [vmem:[%s155_s1 + $0x38] sm:$0xff] }
   0x3   :  { %v17_v5 = vld [vmem:[%s156_s0] sm:$0xff]  ;;  %v28_v8 = vsel %vm20_vm1, %v18_v6, 0.0  ;;  %v53_v12 = vld [vmem:[%s155_s1 + $0x30] sm:$0xff]  ;;  %v52_v15 = vld [vmem:[%s155_s1 + $0x28] sm:$0xff] }
   0x4   :  { %67 = vmatpush.msra.mxu0 %v57_v1  ;;  %v21_v7 = vsel %vm20_vm1, %v17_v5, 0.0  ;;  %v29_v11 = vrot.slane %v28_v8, 4  ;;  %v51_v18 = vld [vmem:[%s155_s1 + $0x20] sm:$0xff]  ;;  %v50_v21 = vld [vmem:[%s155_s1 + $0x18] sm:$0xff]  ;;  %v49_v24 = vld [vmem:[%s155_s1 + $0x10] sm:$0xff] }
   0x5   :  { %v22_v10 = vrot.slane %v21_v7, 4  ;;  %v48_v28 = vld [vmem:[%s155_s1 + $0x8] sm:$0xff]  ;;  %v47_v31 = vld [vmem:[%s155_s1] sm:$0xff] }
   0x6   :  { %68 = vmatpush.msra.mxu0 %v56_v3  ;;  %v30_v14 = vadd.f32 %v29_v11, %v28_v8 }
   0x7   :  { %v23_v13 = vadd.f32 %v22_v10, %v21_v7 }
   0x8   :  { %69 = vmatpush.msra.mxu0 %v55_v4  ;;  %v31_v17 = vrot.slane %v30_v14, 2  ;;  %v19_v25 = vld [vmem:[#allocation2] sm:$0x3] }
   0x9   :  { %v24_v16 = vrot.slane %v23_v13, 2 }
   0xa   :  { %70 = vmatpush.msra.mxu0 %v54_v9  ;;  %v32_v20 = vadd.f32 %v31_v17, %v30_v14 }
   0xb   :  { %v25_v19 = vadd.f32 %v24_v16, %v23_v13 }
   0xc   :  { %71 = vmatpush.msra.mxu0 %v53_v12  ;;  %v33_v23 = vrot.slane %v32_v20, 1 }
   0xd   :  { %v26_v22 = vrot.slane %v25_v19, 1 }
   0xe   :  { %72 = vmatpush.msra.mxu0 %v52_v15  ;;  %v34_v27 = vadd.f32 %v33_v23, %v32_v20 }
   0xf   :  { %v27_v26 = vadd.f32 %v26_v22, %v25_v19 }
  0x10   :  { %73 = vmatpush.msra.mxu0 %v51_v18 }
  0x11   :  { %v38_v29 = vsel %vm37_vm2, %v34_v27, %v27_v26 }
  0x12   :  { %74 = vmatpush.msra.mxu0 %v50_v21  ;;  %v40_v30 = vadd.f32 %v38_v29, %v19_v25 }
  0x14   :  { %75 = vmatpush.msra.mxu0 %v49_v24  ;;  %42 = vst.msk [vmem:[#allocation2] sm:$0x3] %vm15_vm0, %v40_v30 }
  0x16   :  { %76 = vmatpush.msra.mxu0 %v48_v28 }
  0x18   :  { %77 = vmatpush.msra.mxu0 %v47_v31 }
  0x1b   :  { %v46_v32 = vld [vmem:[#allocation2] sm:$0x3] }
  0x1c   :  { %87 = vmatmul.msk.f32.vlgmr.msra.gmra.mxu0 %vm20_vm1, %v46_v32 }
  0x99   :  { %v79_v33 = vpop.f32.mrf.mxu0 }
  0x9a   :  { %82 = vst [vmem:[%s157_s2] sm:$0x3] %v79_v33 }

</bundles_post_ra>
